<compile_context>
chip_gen: v7x
topology: tpu7x:2x2x1
jax: 0.10.0
libtpu: 0.0.40
codegen_flags: <defaults>
</compile_context>

<pallas_src>
import functools

import jax
import jax.numpy as jnp
from jax.experimental import pallas as pl
from jax.experimental.pallas import tpu as pltpu

_LANE = 128      # lane width: last dim of every tile should be a multiple of this
_SUBLANE = 8     # sublane width: second-to-last dim alignment


def _cdiv(a, b):
    return -(-a // b)


def _round_up(x, m):
    return ((x + m - 1) // m) * m


def _vmem_limit_bytes():
    """Physical-VMEM-aware scoped limit (scoped defaults are far below physical)."""
    try:
        cap = pltpu.get_tpu_info().vmem_capacity_bytes
    except Exception:
        cap = 128 * 1024 * 1024
    # ~12.5% headroom for compiler scratch: ~112 MiB on v5e/v6e, ~56 MiB on v7x.
    return int(cap - cap // 8)


def _mlp_kernel(x_ref, w1_ref, b1_ref, w2_ref, b2_ref, w3_ref, b3_ref, o_ref):
    # Feed the MXU bf16 operands (bf16-native on v5e/v6e/v7x); accumulate in f32.
    x = x_ref[...].astype(jnp.bfloat16)
    # fc1 + ReLU
    h1 = jnp.dot(x, w1_ref[...], preferred_element_type=jnp.float32)
    h1 = jnp.maximum(h1 + b1_ref[...], 0.0)
    # fc2 + ReLU
    h2 = jnp.dot(h1.astype(jnp.bfloat16), w2_ref[...],
                 preferred_element_type=jnp.float32)
    h2 = jnp.maximum(h2 + b2_ref[...], 0.0)
    # fc3 (logits, no activation)
    out = jnp.dot(h2.astype(jnp.bfloat16), w3_ref[...],
                  preferred_element_type=jnp.float32)
    o_ref[...] = (out + b3_ref[...]).astype(o_ref.dtype)
    # TODO(synk): for very large hidden sizes on v5e, chunk fc1's N / fc2's K with a
    # short unrolled lax.fori_loop so the f32 h1/h2 temporaries stay within a few vregs.


@functools.partial(jax.jit, static_argnames=("num_classes", "block_b_max"))
def mlp_forward(x, w1p, b1p, w2p, b2p, w3p, b3p, *, num_classes, block_b_max=256):
    """x: [B, D_in] (f32); w_ip: pre-padded bf16 [in_p, out_p]; b_ip: pre-padded f32 [1, out_p].

    Returns [B, num_classes] in x.dtype.
    """
    B, D_in = x.shape
    Dp, H1p = w1p.shape
    H2p = w2p.shape[1]
    Cp = w3p.shape[1]

    # Balanced batch tiling: padding waste < 8 rows per tile, and at least two
    # "parallel" grid steps (when the batch allows) so both v7x TensorCores are used.
    num_tiles = _cdiv(B, block_b_max)
    if B >= 2 * _SUBLANE:
        num_tiles = max(num_tiles, 2)
    block_b = _round_up(_cdiv(B, num_tiles), _SUBLANE)
    Bp = num_tiles * block_b

    # Only the activation may still need padding per call (weights are pre-padded
    # once at load time); skip the pad op entirely when already aligned.
    if (Bp, Dp) != (B, D_in):
        x = jnp.pad(x, ((0, Bp - B), (0, Dp - D_in)))

    flops = 2 * Bp * (Dp * H1p + H1p * H2p + H2p * Cp)
    bytes_accessed = (
        x.size * x.dtype.itemsize
        + sum(a.size * a.dtype.itemsize for a in (w1p, b1p, w2p, b2p, w3p, b3p))
        + Bp * Cp * x.dtype.itemsize
    )

    out_padded = pl.pallas_call(
        _mlp_kernel,
        out_shape=jax.ShapeDtypeStruct((Bp, Cp), x.dtype),
        grid_spec=pltpu.PrefetchScalarGridSpec(
            num_scalar_prefetch=0,
            grid=(num_tiles,),
            in_specs=[
                # batch tile of activations (lane-dense, 128-multiple features)
                pl.BlockSpec((block_b, Dp), lambda i: (i, 0)),
                # Weights / biases: constant index maps -> resident in VMEM.
                # TODO(synk): single-buffer these (pipeline_mode=pl.Buffered(1)) after
                # verifying the Mosaic VMEM report, and for very large hidden sizes on
                # v7x (64 MiB VMEM) stream K/N weight tiles with a pl.when-initialized
                # f32 accumulator instead of keeping all three weights fully resident.
                pl.BlockSpec((Dp, H1p), lambda i: (0, 0)),
                pl.BlockSpec((1, H1p), lambda i: (0, 0)),
                pl.BlockSpec((H1p, H2p), lambda i: (0, 0)),
                pl.BlockSpec((1, H2p), lambda i: (0, 0)),
                pl.BlockSpec((H2p, Cp), lambda i: (0, 0)),
                pl.BlockSpec((1, Cp), lambda i: (0, 0)),
            ],
            # lane-dense output slab (Cp is a multiple of 128 -> unmasked stores)
            out_specs=pl.BlockSpec((block_b, Cp), lambda i: (i, 0)),
        ),
        compiler_params=pltpu.CompilerParams(
            dimension_semantics=("parallel",),
            vmem_limit_bytes=_vmem_limit_bytes(),
        ),
        cost_estimate=pl.CostEstimate(
            flops=flops, transcendentals=0, bytes_accessed=bytes_accessed),
    )(x, w1p, b1p, w2p, b2p, w3p, b3p)

    return out_padded[:B, :num_classes]


def init_mlp_params(key, input_size, hidden_sizes, num_classes, dtype=jnp.float32):
    """Deterministic init mimicking nn.Linear's U(-1/sqrt(fan_in), 1/sqrt(fan_in)).
    Weights are stored as [in, out] (transposed vs. PyTorch's [out, in])."""
    dims = [input_size, hidden_sizes[0], hidden_sizes[1], num_classes]
    params = []
    for layer in range(3):
        fan_in, fan_out = dims[layer], dims[layer + 1]
        key, kw, kb = jax.random.split(key, 3)
        bound = 1.0 / jnp.sqrt(jnp.float32(fan_in))
        w = jax.random.uniform(kw, (fan_in, fan_out), dtype, -bound, bound)
        b = jax.random.uniform(kb, (1, fan_out), dtype, -bound, bound)
        params += [w, b]
    return tuple(params)


def prepare_mlp_params(w1, b1, w2, b2, w3, b3, *, weight_dtype=jnp.bfloat16):
    """One-time (load-time) lane-padding + bf16 cast, outside the per-call path.

    Zero padding is exact: padded input columns / weight rows are zero, ReLU(0)=0
    carries zeros through, and padded output columns are sliced off by the wrapper.
    Biases stay f32 since they are added to the f32 accumulator.
    """
    def pad2(a, rows, cols):
        return jnp.pad(a, ((0, rows - a.shape[0]), (0, cols - a.shape[1])))

    Dp = _round_up(w1.shape[0], _LANE)
    H1p = _round_up(w1.shape[1], _LANE)
    H2p = _round_up(w2.shape[1], _LANE)
    Cp = _round_up(w3.shape[1], _LANE)

    w1p = pad2(w1, Dp, H1p).astype(weight_dtype)
    b1p = pad2(b1, 1, H1p).astype(jnp.float32)
    w2p = pad2(w2, H1p, H2p).astype(weight_dtype)
    b2p = pad2(b2, 1, H2p).astype(jnp.float32)
    w3p = pad2(w3, H2p, Cp).astype(weight_dtype)
    b3p = pad2(b3, 1, Cp).astype(jnp.float32)
    return w1p, b1p, w2p, b2p, w3p, b3p


def mlp_reference(x, w1, b1, w2, b2, w3, b3):
    h1 = jnp.maximum(x @ w1 + b1, 0.0)
    h2 = jnp.maximum(h1 @ w2 + b2, 0.0)
    return h2 @ w3 + b3


if __name__ == "__main__":
    # Small shapes consistent with the module: batch=16, input=64, hidden=[128, 64], classes=32
    batch = 16
    input_size = 64
    hidden_sizes = (128, 64)
    num_classes = 32

    key = jax.random.PRNGKey(0)
    key, kx = jax.random.split(key)
    x = jax.random.normal(kx, (batch, input_size), jnp.float32)

    w1, b1, w2, b2, w3, b3 = init_mlp_params(key, input_size, hidden_sizes, num_classes)
    # Pad + cast once (load time), not per forward call.
    padded_params = prepare_mlp_params(w1, b1, w2, b2, w3, b3)
    padded_params = jax.block_until_ready(padded_params)

    out = mlp_forward(x, *padded_params, num_classes=num_classes)
    out = jax.block_until_ready(out)

    ref = mlp_reference(x, w1, b1, w2, b2, w3, b3)
    assert out.shape == (batch, num_classes)
    # bf16 MXU operands with f32 accumulation -> looser tolerance vs. the f32 reference.
    assert jnp.allclose(out, ref, atol=5e-2, rtol=5e-2), "Pallas output mismatch vs. reference"

    print("KERNEL_OK")
</pallas_src>

<mosaic_0001>
module attributes {stable_mosaic.version = 11 : i64} {
  func.func @_mlp_kernel(%arg0: i32, %arg1: memref<8x128xf32, #tpu.memory_space<vmem>>, %arg2: memref<128x128xbf16, #tpu.memory_space<vmem>>, %arg3: memref<1x128xf32, #tpu.memory_space<vmem>>, %arg4: memref<128x128xbf16, #tpu.memory_space<vmem>>, %arg5: memref<1x128xf32, #tpu.memory_space<vmem>>, %arg6: memref<128x128xbf16, #tpu.memory_space<vmem>>, %arg7: memref<1x128xf32, #tpu.memory_space<vmem>>, %arg8: memref<8x128xf32, #tpu.memory_space<vmem>>) attributes {dimension_semantics = [#tpu.dimension_semantics<parallel>], iteration_bounds = array<i64: 2>, scalar_prefetch = 0 : i64, scratch_operands = 0 : i64, tpu.core_type = #tpu.core_type<tc>, window_params = [{transform_indices = @transform_0, window_bounds = array<i64: 8, 128>}, {pipeline_mode = #tpu.pipeline_mode<synchronous>, transform_indices = @transform_1, window_bounds = array<i64: 128, 128>}, {pipeline_mode = #tpu.pipeline_mode<synchronous>, transform_indices = @transform_2, window_bounds = array<i64: 1, 128>}, {pipeline_mode = #tpu.pipeline_mode<synchronous>, transform_indices = @transform_3, window_bounds = array<i64: 128, 128>}, {pipeline_mode = #tpu.pipeline_mode<synchronous>, transform_indices = @transform_4, window_bounds = array<i64: 1, 128>}, {pipeline_mode = #tpu.pipeline_mode<synchronous>, transform_indices = @transform_5, window_bounds = array<i64: 128, 128>}, {pipeline_mode = #tpu.pipeline_mode<synchronous>, transform_indices = @transform_6, window_bounds = array<i64: 1, 128>}, {transform_indices = @transform_7, window_bounds = array<i64: 8, 128>}]} {
    %c0 = arith.constant 0 : index
    %c0_0 = arith.constant 0 : index
    %0 = vector.load %arg1[%c0, %c0_0] : memref<8x128xf32, #tpu.memory_space<vmem>>, vector<8x128xf32>
    %1 = arith.truncf %0 : vector<8x128xf32> to vector<8x128xbf16>
    %c0_1 = arith.constant 0 : index
    %c0_2 = arith.constant 0 : index
    %2 = vector.load %arg2[%c0_1, %c0_2] : memref<128x128xbf16, #tpu.memory_space<vmem>>, vector<128x128xbf16>
    %cst = arith.constant dense<0.000000e+00> : vector<8x128xf32>
    %3 = tpu.matmul %1, %2, %cst {dimension_numbers = #tpu.dot_dimension_numbers<[1], [0], [0], [1], [0, 0, 1, 1], [], []>} : vector<8x128xbf16>, vector<128x128xbf16>, vector<8x128xf32> -> vector<8x128xf32>
    %c0_3 = arith.constant 0 : index
    %c0_4 = arith.constant 0 : index
    %4 = vector.load %arg3[%c0_3, %c0_4] : memref<1x128xf32, #tpu.memory_space<vmem>>, vector<1x128xf32>
    %5 = vector.broadcast %4 : vector<1x128xf32> to vector<8x128xf32>
    %6 = arith.addf %3, %5 : vector<8x128xf32>
    %cst_5 = arith.constant 0.000000e+00 : f32
    %7 = vector.broadcast %cst_5 : f32 to vector<8x128xf32>
    %8 = arith.maximumf %6, %7 : vector<8x128xf32>
    %9 = arith.truncf %8 : vector<8x128xf32> to vector<8x128xbf16>
    %c0_6 = arith.constant 0 : index
    %c0_7 = arith.constant 0 : index
    %10 = vector.load %arg4[%c0_6, %c0_7] : memref<128x128xbf16, #tpu.memory_space<vmem>>, vector<128x128xbf16>
    %cst_8 = arith.constant dense<0.000000e+00> : vector<8x128xf32>
    %11 = tpu.matmul %9, %10, %cst_8 {dimension_numbers = #tpu.dot_dimension_numbers<[1], [0], [0], [1], [0, 0, 1, 1], [], []>} : vector<8x128xbf16>, vector<128x128xbf16>, vector<8x128xf32> -> vector<8x128xf32>
    %c0_9 = arith.constant 0 : index
    %c0_10 = arith.constant 0 : index
    %12 = vector.load %arg5[%c0_9, %c0_10] : memref<1x128xf32, #tpu.memory_space<vmem>>, vector<1x128xf32>
    %13 = vector.broadcast %12 : vector<1x128xf32> to vector<8x128xf32>
    %14 = arith.addf %11, %13 : vector<8x128xf32>
    %cst_11 = arith.constant 0.000000e+00 : f32
    %15 = vector.broadcast %cst_11 : f32 to vector<8x128xf32>
    %16 = arith.maximumf %14, %15 : vector<8x128xf32>
    %17 = arith.truncf %16 : vector<8x128xf32> to vector<8x128xbf16>
    %c0_12 = arith.constant 0 : index
    %c0_13 = arith.constant 0 : index
    %18 = vector.load %arg6[%c0_12, %c0_13] : memref<128x128xbf16, #tpu.memory_space<vmem>>, vector<128x128xbf16>
    %cst_14 = arith.constant dense<0.000000e+00> : vector<8x128xf32>
    %19 = tpu.matmul %17, %18, %cst_14 {dimension_numbers = #tpu.dot_dimension_numbers<[1], [0], [0], [1], [0, 0, 1, 1], [], []>} : vector<8x128xbf16>, vector<128x128xbf16>, vector<8x128xf32> -> vector<8x128xf32>
    %c0_15 = arith.constant 0 : index
    %c0_16 = arith.constant 0 : index
    %20 = vector.load %arg7[%c0_15, %c0_16] : memref<1x128xf32, #tpu.memory_space<vmem>>, vector<1x128xf32>
    %21 = vector.broadcast %20 : vector<1x128xf32> to vector<8x128xf32>
    %22 = arith.addf %19, %21 : vector<8x128xf32>
    %c0_17 = arith.constant 0 : index
    %c0_18 = arith.constant 0 : index
    %23 = vector.load %arg8[%c0_17, %c0_18] : memref<8x128xf32, #tpu.memory_space<vmem>>, vector<8x128xf32>
    tpu.vector_store %arg8[%c0_17, %c0_18], %22 {strides = array<i32>} : memref<8x128xf32, #tpu.memory_space<vmem>>, vector<8x128xf32>,
    return
  }
  func.func @transform_0(%arg0: i32) -> (i32, i32) {
    %c0_i32 = arith.constant 0 : i32
    %c0_i32_0 = arith.constant 0 : i32
    return %arg0, %c0_i32 : i32, i32
  }
  func.func @transform_1(%arg0: i32) -> (i32, i32) {
    %c0_i32 = arith.constant 0 : i32
    %c0_i32_0 = arith.constant 0 : i32
    %c0_i32_1 = arith.constant 0 : i32
    return %c0_i32, %c0_i32_0 : i32, i32
  }
  func.func @transform_2(%arg0: i32) -> (i32, i32) {
    %c0_i32 = arith.constant 0 : i32
    %c0_i32_0 = arith.constant 0 : i32
    %c0_i32_1 = arith.constant 0 : i32
    return %c0_i32, %c0_i32_0 : i32, i32
  }
  func.func @transform_3(%arg0: i32) -> (i32, i32) {
    %c0_i32 = arith.constant 0 : i32
    %c0_i32_0 = arith.constant 0 : i32
    %c0_i32_1 = arith.constant 0 : i32
    return %c0_i32, %c0_i32_0 : i32, i32
  }
  func.func @transform_4(%arg0: i32) -> (i32, i32) {
    %c0_i32 = arith.constant 0 : i32
    %c0_i32_0 = arith.constant 0 : i32
    %c0_i32_1 = arith.constant 0 : i32
    return %c0_i32, %c0_i32_0 : i32, i32
  }
  func.func @transform_5(%arg0: i32) -> (i32, i32) {
    %c0_i32 = arith.constant 0 : i32
    %c0_i32_0 = arith.constant 0 : i32
    %c0_i32_1 = arith.constant 0 : i32
    return %c0_i32, %c0_i32_0 : i32, i32
  }
  func.func @transform_6(%arg0: i32) -> (i32, i32) {
    %c0_i32 = arith.constant 0 : i32
    %c0_i32_0 = arith.constant 0 : i32
    %c0_i32_1 = arith.constant 0 : i32
    return %c0_i32, %c0_i32_0 : i32, i32
  }
  func.func @transform_7(%arg0: i32) -> (i32, i32) {
    %c0_i32 = arith.constant 0 : i32
    %c0_i32_0 = arith.constant 0 : i32
    return %arg0, %c0_i32 : i32, i32
  }
}

</mosaic_0001>

<bundles_post_ra>
// kernel: mlp_forward.1
= control target key start
LH: loop header
LB: loop body
LE: loop exit
PB: predicated region body
PF: predicated region fallthrough
CT: control target
= control target key end

     0   :  { %12 = vsyncpa [#allocation3], 0  ;;  %s1826_s0 = inlined_call_operand.hbm [shape: f32[16,128], index: 0, kind: input, shape index: {}]   ;;  %s1827_s1 = inlined_call_operand.hbm [shape: bf16[128,128], index: 1, kind: input, shape index: {}]   ;;  %s1828_s2 = inlined_call_operand.hbm [shape: f32[1,128], index: 2, kind: input, shape index: {}]   ;;  %s1829_s3 = inlined_call_operand.hbm [shape: bf16[128,128], index: 3, kind: input, shape index: {}]   ;;  %s1830_s4 = inlined_call_operand.hbm [shape: f32[1,128], index: 4, kind: input, shape index: {}]   ;;  %s1831_s5 = inlined_call_operand.hbm [shape: bf16[128,128], index: 5, kind: input, shape index: {}]   ;;  %s1832_s6 = inlined_call_operand.hbm [shape: f32[1,128], index: 6, kind: input, shape index: {}]   ;;  %s1833_s7 = inlined_call_operand.hbm [shape: f32[16,128], index: 7, kind: output, shape index: {}]  }
   0x1   :  { %14 = vsyncpa [#allocation3 + $0x1], 0 }
   0x2   :  { %15 = vsyncpa [#allocation6], 0 }
   0x3   :  { %16 = vsyncpa [#allocation9], 0 }
   0x4   :  { %17 = vsyncpa [#allocation12], 0 }
   0x5   :  { %18 = vsyncpa [#allocation4], 0 }
   0x6   :  { %20 = vsyncpa [#allocation4 + $0x1], 0  ;;  %s1460_s24 = smov 0   ;;  %s1462_s25 = smov 0  }
   0x7   :  { %s1464_s26 = smov 0   ;;  %s1466_s27 = smov 0  }
   0x8 LB: > { %s1408_s28 = smov [#allocation5]   ;;  %s1481_s30 = sadd.s32 4294967295, %s1406_s27   ;;  %s1406_s27 = sphi %s1466_s27, %s1859_s27   ;;  %s1402_s26 = sphi %s1464_s26, %s1858_s26   ;;  %s1398_s25 = sphi %s1462_s25, %s1857_s25   ;;  %s1394_s24 = sphi %s1460_s24, %s1856_s24  }
   0x9   : > { %s221_s29 = sshll.u32 %s1408_s28, 4  ;;  %p858_p0 = scmp.ge.s32.totalorder %s1406_s27, 1  ;;  %s1486_s29 = int_to_ptr.vmem [resolvable:$true] %s221_s29 }
   0xa   : > { %p1834_p1 = scmp.eq.s32.totalorder %s1481_s30, 0  ;;  %p209_p2 = scmp.lt.s32.totalorder %s1406_s27, 3 }
   0xb   : > { %s1409_s9 = smov [#allocation8]   ;;  %s1410_s12 = smov [#allocation11]  }
   0xc   : > { %p1488_p3 = pnand %p858_p0, %p209_p2  ;;  %s245_s10 = sshll.u32 %s1409_s9, 4  ;;  %s1501_s10 = int_to_ptr.vmem [resolvable:$true] %s245_s10 }
   0xd   : > { %s269_s13 = sshll.u32 %s1410_s12, 4  ;;  %s1130_s16 = scalar_lea.hbm %s1827_s1, 1024  ;;  %s1503_s13 = int_to_ptr.vmem [resolvable:$true] %s269_s13 }
   0xe   : > { %s1837_s8 = scalar_select %p1488_p3, 1, 0 }
   0xf   : > { %p1023_p5 = pneg %p1488_p3  ;;  %p1131_p7 = scmp.ne.s32.totalorder %s1827_s1, %s1130_s16 }
  0x10   : > { %p1137_p11 = scmp.lt.u32.totalorder %s1130_s16, %s1827_s1 }
  0x11   : > { %p1497_p6 = pnand %p1023_p5, %p1834_p1 }
  0x13   : > { %p1513_p8 = pneg %p1497_p6 }
  0x15   : > { %p1133_p9 = pnand %p1513_p8, %p1131_p7 }
  0x17   : > { %p1134_p10 = pneg %p1133_p9 }
  0x19   : > { %p1139_p12 = pnand %p1137_p11, %p1134_p10 }
  0x1b   : > { %1142 = shalt.err (!%p1139_p12)
}
  0x1c   : > { %s1143_s22 = scalar_lea.vmem %s1486_s29, 1024  ;;  %p1151_p5 = scmp.lt.s32.totalorder %s1486_s29, %s1486_s29 }
  0x1d   : > { %p1144_p13 = scmp.ne.s32.totalorder %s1486_s29, %s1143_s22  ;;  %p1152_p4 = scmp.lt.s32.totalorder %s1143_s22, %s1143_s22 }
  0x1f   : > { %p1146_p0 = pnand %p1144_p13, %p1513_p8  ;;  %p1153_p7 = por %p1152_p4, %p1151_p5 }
  0x21   : > { %p1147_p2 = pneg %p1146_p0 }
  0x23   : > { %p1154_p9 = pnand %p1153_p7, %p1147_p2 }
  0x25   : > { %1157 = shalt.err (!%p1154_p9)
}
  0x26   : > { %s1411_s23 = smov 64   ;;  %s1412_s28 = smov 4  }
  0x27   : > { %1026 = dma.hbm_to_vmem [thread:$0]  (!%p1497_p6), %s1827_s1, 1024, %s1486_s29, [#allocation6], %s1411_s23, %s1411_s23, %s1412_s28  }
  0x28   : > { %s1158_s16 = scalar_lea.hbm %s1829_s3, 1024 }
  0x29   : > { %p1159_p4 = scmp.ne.s32.totalorder %s1829_s3, %s1158_s16  ;;  %p1165_p12 = scmp.lt.u32.totalorder %s1158_s16, %s1829_s3 }
  0x2b   : > { %p1161_p10 = pnand %p1159_p4, %p1513_p8 }
  0x2d   : > { %p1162_p11 = pneg %p1161_p10 }
  0x2f   : > { %p1167_p13 = pnand %p1165_p12, %p1162_p11 }
  0x31   : > { %1170 = shalt.err (!%p1167_p13)
}
  0x32   : > { %s1171_s29 = scalar_lea.vmem %s1501_s10, 1024  ;;  %p1179_p7 = scmp.lt.s32.totalorder %s1501_s10, %s1501_s10 }
  0x33   : > { %p1172_p0 = scmp.ne.s32.totalorder %s1501_s10, %s1171_s29  ;;  %p1180_p9 = scmp.lt.s32.totalorder %s1171_s29, %s1171_s29 }
  0x35   : > { %p1174_p2 = pnand %p1172_p0, %p1513_p8  ;;  %p1181_p4 = por %p1180_p9, %p1179_p7 }
  0x37   : > { %p1175_p5 = pneg %p1174_p2 }
  0x39   : > { %p1182_p10 = pnand %p1181_p4, %p1175_p5 }
  0x3b   : > { %1185 = shalt.err (!%p1182_p10)
}
  0x3c   : > { %1032 = dma.hbm_to_vmem [thread:$0]  (!%p1497_p6), %s1829_s3, 1024, %s1501_s10, [#allocation9], %s1411_s23, %s1411_s23, %s1412_s28  }
  0x3d   : > { %s1186_s15 = scalar_lea.hbm %s1831_s5, 1024 }
  0x3e   : > { %p1187_p11 = scmp.ne.s32.totalorder %s1831_s5, %s1186_s15  ;;  %p1193_p0 = scmp.lt.u32.totalorder %s1186_s15, %s1831_s5 }
  0x40   : > { %p1189_p12 = pnand %p1187_p11, %p1513_p8 }
  0x42   : > { %p1190_p13 = pneg %p1189_p12 }
  0x44   : > { %p1195_p2 = pnand %p1193_p0, %p1190_p13 }
  0x46   : > { %1198 = shalt.err (!%p1195_p2)
}
  0x47   : > { %s1199_s10 = scalar_lea.vmem %s1503_s13, 1024  ;;  %p1207_p4 = scmp.lt.s32.totalorder %s1503_s13, %s1503_s13 }
  0x48   : > { %p1200_p5 = scmp.ne.s32.totalorder %s1503_s13, %s1199_s10  ;;  %p1208_p10 = scmp.lt.s32.totalorder %s1199_s10, %s1199_s10 }
  0x4a   : > { %p1202_p7 = pnand %p1200_p5, %p1513_p8  ;;  %p1209_p11 = por %p1208_p10, %p1207_p4 }
  0x4c   : > { %p1203_p9 = pneg %p1202_p7 }
  0x4e   : > { %p1210_p12 = pnand %p1209_p11, %p1203_p9 }
  0x50   : > { %1213 = shalt.err (!%p1210_p12)
}
  0x51   : > { %1038 = dma.hbm_to_vmem [thread:$0]  (!%p1497_p6), %s1831_s5, 1024, %s1503_s13, [#allocation12], %s1411_s23, %s1411_s23, %s1412_s28  }
  0x52   : > { %s1413_s22 = smov [#allocation7]   ;;  %s1414_s12 = smov [#allocation10]  }
  0x53   : > { %s235_s9 = sshll.u32 %s1413_s22, 4  ;;  %s259_s14 = sshll.u32 %s1414_s12, 4  ;;  %s236_s9 = int_to_ptr.vmem [resolvable:$true] %s235_s9  ;;  %s260_s14 = int_to_ptr.vmem [resolvable:$true] %s259_s14 }
  0x54   : > { %s1214_s17 = scalar_lea.hbm %s1828_s2, 16 }
  0x55   : > { %p1215_p13 = scmp.ne.s32.totalorder %s1828_s2, %s1214_s17  ;;  %p1221_p5 = scmp.lt.u32.totalorder %s1214_s17, %s1828_s2 }
  0x57   : > { %p1217_p0 = pnand %p1215_p13, %p1513_p8 }
  0x59   : > { %p1218_p2 = pneg %p1217_p0 }
  0x5b   : > { %p1223_p7 = pnand %p1221_p5, %p1218_p2 }
  0x5d   : > { %1226 = shalt.err (!%p1223_p7)
}
  0x5e   : > { %s1227_s13 = scalar_lea.vmem %s236_s9, 16  ;;  %s1234_s23 = scalar_lea.vmem %s236_s9, 32 }
  0x5f   : > { %p1228_p9 = scmp.ne.s32.totalorder %s236_s9, %s1227_s13  ;;  %p1235_p11 = scmp.lt.s32.totalorder %s236_s9, %s236_s9 }
  0x60   : > { %p1236_p12 = scmp.lt.s32.totalorder %s1234_s23, %s1227_s13 }
  0x61   : > { %p1230_p4 = pnand %p1228_p9, %p1513_p8 }
  0x62   : > { %p1237_p1 = por %p1236_p12, %p1235_p11 }
  0x63   : > { %p1231_p10 = pneg %p1230_p4 }
  0x65   : > { %p1238_p3 = pnand %p1237_p1, %p1231_p10 }
  0x67   : > { %1241 = shalt.err (!%p1238_p3)
}
  0x68   : > { %1029 = dma.hbm_to_vmem [thread:$0]  (!%p1497_p6), %s1828_s2, 16, %s236_s9, [#allocation6]  }
  0x69   : > { %s1242_s15 = scalar_lea.hbm %s1830_s4, 16 }
  0x6a   : > { %p1243_p13 = scmp.ne.s32.totalorder %s1830_s4, %s1242_s15  ;;  %p1249_p3 = scmp.lt.u32.totalorder %s1242_s15, %s1830_s4 }
  0x6c   : > { %p1245_p0 = pnand %p1243_p13, %p1513_p8 }
  0x6e   : > { %p1246_p1 = pneg %p1245_p0 }
  0x70   : > { %p1251_p2 = pnand %p1249_p3, %p1246_p1 }
  0x72   : > { %1254 = shalt.err (!%p1251_p2)
}
  0x73   : > { %s1255_s10 = scalar_lea.vmem %s260_s14, 16  ;;  %s1262_s9 = scalar_lea.vmem %s260_s14, 32 }
  0x74   : > { %p1256_p5 = scmp.ne.s32.totalorder %s260_s14, %s1255_s10  ;;  %p1263_p4 = scmp.lt.s32.totalorder %s260_s14, %s260_s14 }
  0x75   : > { %p1264_p10 = scmp.lt.s32.totalorder %s1262_s9, %s1255_s10 }
  0x76   : > { %p1258_p7 = pnand %p1256_p5, %p1513_p8 }
  0x77   : > { %p1265_p11 = por %p1264_p10, %p1263_p4 }
  0x78   : > { %p1259_p9 = pneg %p1258_p7 }
  0x7a   : > { %p1266_p12 = pnand %p1265_p11, %p1259_p9 }
  0x7c   : > { %1269 = shalt.err (!%p1266_p12)
}
  0x7d   : > { %1035 = dma.hbm_to_vmem [thread:$0]  (!%p1497_p6), %s1830_s4, 16, %s260_s14, [#allocation9]  }
  0x7e   : > { %s1415_s23 = smov [#allocation13]   ;;  %s1270_s12 = scalar_lea.hbm %s1832_s6, 16 }
  0x7f   : > { %s283_s28 = sshll.u32 %s1415_s23, 4  ;;  %p1271_p13 = scmp.ne.s32.totalorder %s1832_s6, %s1270_s12  ;;  %s284_s28 = int_to_ptr.vmem [resolvable:$true] %s283_s28 }
  0x80   : > { %p1277_p3 = scmp.lt.u32.totalorder %s1270_s12, %s1832_s6 }
  0x81   : > { %p1273_p0 = pnand %p1271_p13, %p1513_p8 }
  0x83   : > { %p1274_p1 = pneg %p1273_p0 }
  0x85   : > { %p1279_p2 = pnand %p1277_p3, %p1274_p1 }
  0x87   : > { %1282 = shalt.err (!%p1279_p2)
}
  0x88   : > { %s1283_s14 = scalar_lea.vmem %s284_s28, 16  ;;  %s1290_s20 = scalar_lea.vmem %s284_s28, 32 }
  0x89   : > { %p1284_p5 = scmp.ne.s32.totalorder %s284_s28, %s1283_s14  ;;  %p1291_p4 = scmp.lt.s32.totalorder %s284_s28, %s284_s28 }
  0x8a   : > { %p1292_p10 = scmp.lt.s32.totalorder %s1290_s20, %s1283_s14 }
  0x8b   : > { %p1286_p7 = pnand %p1284_p5, %p1513_p8 }
  0x8c   : > { %p1293_p11 = por %p1292_p10, %p1291_p4 }
  0x8d   : > { %p1287_p9 = pneg %p1286_p7 }
  0x8f   : > { %p1294_p12 = pnand %p1293_p11, %p1287_p9 }
  0x91   : > { %1297 = shalt.err (!%p1294_p12)
}
  0x92   : > { %1041 = dma.hbm_to_vmem [thread:$0]  (!%p1497_p6), %s1832_s6, 16, %s284_s28, [#allocation12]  }
  0x93   : > { %s857_s19 = sadd.s32 4294967294, %s1406_s27   ;;  %s1645_s11 = sadd.s32 1, %s1406_s27  }
  0x94   : > { %s30_s21 = ssub.s32 %s1406_s27, %s1645_s11  ;;  %s33_s13 = sadd.s32 1, %s1402_s26 }
  0x95   : > { %p31_p8 = scmp.eq.s32.totalorder %s30_s21, 0  ;;  %p40_p13 = scmp.ne.s32.totalorder %s1402_s26, %s1398_s25 }
  0x96   : > { %p41_p0 = scmp.eq.s32.totalorder %s1406_s27, 0  ;;  %p46_p1 = scmp.ne.s32.totalorder %s1398_s25, %s1394_s24 }
  0x97   : > { %s1656_s23 = scalar_select %p31_p8, %s1402_s26, %s33_s13  }
  0x98   : > { %p1658_p3 = por %p41_p0, %p40_p13  ;;  %p1841_p2 = scmp.eq.s32.totalorder %s1481_s30, 0 }
  0x99   : > { %p196_p5 = scmp.eq.s32.totalorder %s1481_s30, 1  ;;  %p202_p7 = scmp.eq.s32.totalorder %s857_s19, 1 }
  0x9a   : > { %p1664_p6 = por %p1841_p2, %p46_p1  ;;  %p1056_p9 = scmp.lt.s32.totalorder %s1406_s27, 2 }
  0x9b   : > { %s294_s22 = sand.u32 1, %s1402_s26   ;;  %p1671_p4 = por %p196_p5, %p40_p13 }
  0x9c   : > { %p1675_p10 = por %p202_p7, %p46_p1  ;;  %s866_s16 = sshll.u32 %s294_s22, 3 }
  0x9d   : > { %s1843_s12 = scalar_select %p1671_p4, 1, 0 }
  0x9e   : > { %s1844_s15 = scalar_select %p1675_p10, 1, 0 }
  0x9f   : > { %s867_s17 = sshll.u32 %s1406_s27, 7  ;;  %s298_s10 = scalar_lea.vmem [#allocation2], %s866_s16 }
  0xa0   : > { %s1683_s20 = scalar_lea.hbm %s1826_s0, %s867_s17  ;;  %s305_s9 = sshll.u32 %s298_s10, 4  ;;  %s1685_s9 = int_to_ptr.vmem [resolvable:$true] %s305_s9 }
  0xa1   : > { %p1689_p11 = pnand %p1056_p9, %p1658_p3  ;;  %s295_s21 = scalar_lea.sflag [#allocation3], %s294_s22 }
  0xa2   : > { %s1298_s13 = scalar_lea.hbm %s1683_s20, 128  ;;  %s1303_s18 = scalar_lea.hbm %s1826_s0, 256 }
  0xa3   : > { %p1299_p12 = scmp.ne.s32.totalorder %s1683_s20, %s1298_s13  ;;  %p1300_p8 = pneg %p1689_p11 }
  0xa4   : > { %p1304_p1 = scmp.lt.u32.totalorder %s1683_s20, %s1826_s0  ;;  %p1305_p3 = scmp.lt.u32.totalorder %s1303_s18, %s1298_s13 }
  0xa5   : > { %p1301_p13 = pnand %p1300_p8, %p1299_p12  ;;  %p1307_p5 = scmp.lt.u32.totalorder %s1298_s13, %s1683_s20 }
  0xa6   : > { %p1306_p2 = por %p1305_p3, %p1304_p1 }
  0xa7   : > { %p1302_p0 = pneg %p1301_p13 }
  0xa8   : > { %p1308_p7 = por %p1307_p5, %p1306_p2 }
  0xaa   : > { %p1309_p9 = pnand %p1308_p7, %p1302_p0 }
  0xac   : > { %1312 = shalt.err (!%p1309_p9)
}
  0xad   : > { %s1313_s22 = scalar_lea.vmem %s1685_s9, 128  ;;  %s1416_s10 = smov [#allocation2]  }
  0xae   : > { %p1314_p12 = scmp.ne.s32.totalorder %s1685_s9, %s1313_s22  ;;  %s1318_s16 = sshll.u32 %s1416_s10, 4  ;;  %s1319_s16 = int_to_ptr.vmem [resolvable:$false] %s1318_s16 }
  0xaf   : > { %s1320_s17 = scalar_lea.vmem %s1319_s16, 256  ;;  %p1321_p4 = scmp.lt.s32.totalorder %s1685_s9, %s1319_s16 }
  0xb0   : > { %p1316_p13 = pnand %p1314_p12, %p1300_p8  ;;  %p1322_p1 = scmp.lt.s32.totalorder %s1320_s17, %s1313_s22 }
  0xb2   : > { %p1317_p10 = pneg %p1316_p13  ;;  %p1323_p3 = por %p1322_p1, %p1321_p4 }
  0xb4   : > { %p1324_p2 = pnand %p1323_p3, %p1317_p10 }
  0xb6   : > { %1327 = shalt.err (!%p1324_p2)
}
  0xb7   : > { %1045 = dma.hbm_to_vmem [thread:$0]  (!%p1689_p11), %s1683_s20, 128, %s1685_s9, %s295_s21  }
  0xb8   : > { %p1846_p0 = scmp.ne.s32.totalorder %s1837_s8, 0 }
  0xb9   : > { %s1721_s13 = sand.u32 (!%p1846_p0), 1, %s1398_s25  }
  0xba   : > { %314 = sbr.rel (%p1846_p0) target bundleno = 901 (0x385), region = 48  ;;  %s869_s18 = sshll.u32 (!%p1846_p0), %s1721_s13, 3 }
  0xbb   : > { %s317_s29 = scalar_lea.sflag (!%p1846_p0), [#allocation3], %s1721_s13  ;;  %s1727_s14 = scalar_lea.vmem (!%p1846_p0), [#allocation2], %s869_s18 }
  0xc1   : > { %1373 = dma.done.wait (%p1664_p6), %s317_s29, 128  }
  0xc2   : > { %1375 = vsyncadd (%p1664_p6), %s317_s29, 4294967168  ;;  %p1847_p4 = scmp.eq.s32.totalorder %s1481_s30, 0 }
  0xc4   : > { %1377 = dma.done.wait (%p1847_p4), [#allocation6], 1040   ;;  %p1848_p10 = pmov %p1847_p4 }
  0xc5   : > { %p1849_p11 = pmov %p1847_p4 }
  0xc6   : > { %1379 = vsyncadd (%p1848_p10), [#allocation6], 4294966256 }
  0xc7   : > { %1381 = dma.done.wait (%p1849_p11), [#allocation9], 1040   ;;  %p1850_p8 = pmov %p1847_p4 }
  0xc8   : > { %p1851_p5 = pmov %p1847_p4 }
  0xc9   : > { %1383 = vsyncadd (%p1850_p8), [#allocation9], 4294966256 }
  0xca   : > { %1385 = dma.done.wait (%p1851_p5), [#allocation12], 1040   ;;  %p1852_p7 = pmov %p1847_p4 }
  0xcb   : > { %v1417_v0 = vmov 0.0   ;;  %vm1418_vm0 = vmmov 0   ;;  %v1106_v1 = vld [vmem:[#allocation5] sm:$0xff]   ;;  %v1107_v2 = vld [vmem:[#allocation5 + $0x8] sm:$0xff]   ;;  %v1108_v3 = vld [vmem:[#allocation5 + $0x10] sm:$0xff]   ;;  %s905_s8 = sshll.u32 %s1481_s30, 7 }
  0xcc   : > { %1387 = vsyncadd (%p1852_p7), [#allocation12], 4294966256  ;;  %935 = vmatprep.subr.bf16.mxu0 %v1417_v0  ;;  %951 = vmatprep.mubr.msk.bf16.mxu0 %vm1418_vm0, %v1417_v0  ;;  %v1114_v4 = vld [vmem:[#allocation8] sm:$0xff]   ;;  %v1109_v5 = vld [vmem:[#allocation5 + $0x18] sm:$0xff]   ;;  %s374_s28 = scalar_lea.vmem [#allocation14], %s869_s18  ;;  %s1782_s21 = scalar_lea.hbm %s1833_s7, %s905_s8 }
  0xcd   : > { %955 = vmatprep.subr.bf16.mxu1 %v1417_v0  ;;  %971 = vmatprep.mubr.msk.bf16.mxu1 %vm1418_vm0, %v1417_v0  ;;  %v1115_v6 = vld [vmem:[#allocation8 + $0x8] sm:$0xff]   ;;  %v1110_v7 = vld [vmem:[#allocation5 + $0x20] sm:$0xff]   ;;  %v1116_v8 = vld [vmem:[#allocation8 + $0x10] sm:$0xff]   ;;  %s730_s20 = sshll.u32 %s374_s28, 4  ;;  %s717_s30 = scalar_lea.sflag [#allocation4], %s1721_s13  ;;  %s1784_s20 = int_to_ptr.vmem [resolvable:$true] %s730_s20 }
  0xce   : > { %936 = vmatpush3.bf16.msra.mxu0 %v1106_v1  ;;  %956 = vmatpush3.bf16.msra.mxu1 %v1114_v4  ;;  %v1111_v9 = vld [vmem:[#allocation5 + $0x28] sm:$0xff]   ;;  %v1117_v10 = vld [vmem:[#allocation8 + $0x18] sm:$0xff]   ;;  %v1112_v11 = vld [vmem:[#allocation5 + $0x30] sm:$0xff]   ;;  %s1328_s22 = scalar_lea.vmem %s1784_s20, 128  ;;  %p1853_p9 = scmp.ne.s32.totalorder %s1843_s12, 0 }
  0xcf   : > { %937 = vmatprep.subr.bf16.mxu0 %v1417_v0  ;;  %957 = vmatprep.subr.bf16.mxu1 %v1417_v0  ;;  %v1118_v12 = vld [vmem:[#allocation8 + $0x20] sm:$0xff]   ;;  %v1113_v13 = vld [vmem:[#allocation5 + $0x38] sm:$0xff]   ;;  %v1119_v15 = vld [vmem:[#allocation8 + $0x28] sm:$0xff]   ;;  %p1329_p6 = scmp.ne.s32.totalorder %s1784_s20, %s1328_s22  ;;  %s1419_s10 = smov [#allocation14]  }
  0xd0   : > { %v376_v14 = vld [vmem:[%s1727_s14] sm:$0xff]  ;;  %v1122_v19 = vld [vmem:[#allocation11] sm:$0xff]   ;;  %v877_v25 = vld [vmem:[#allocation7] ss:$0 sm:$0xff]  ;;  %s1332_s16 = sshll.u32 %s1419_s10, 4  ;;  %s1333_s16 = int_to_ptr.vmem [resolvable:$false] %s1332_s16 }
  0xd1   : > { %v377_v16 = vpack.c.bf16 %v376_v14, %v376_v14  ;;  %v1120_v17 = vld [vmem:[#allocation8 + $0x30] sm:$0xff]   ;;  %v1121_v18 = vld [vmem:[#allocation8 + $0x38] sm:$0xff]   ;;  %v1126_v23 = vld [vmem:[#allocation11 + $0x20] sm:$0xff]   ;;  %p1330_p12 = pnand %p1329_p6, %p1853_p9  ;;  %s1334_s17 = scalar_lea.vmem %s1333_s16, 256 }
  0xd2   : > { %938 = vmatpush3.bf16.msra.mxu0 %v1107_v2  ;;  %958 = vmatpush3.bf16.msra.mxu1 %v1115_v6  ;;  %v1123_v20 = vld [vmem:[#allocation11 + $0x8] sm:$0xff]   ;;  %v1124_v21 = vld [vmem:[#allocation11 + $0x10] sm:$0xff]   ;;  %v1125_v22 = vld [vmem:[#allocation11 + $0x18] sm:$0xff]   ;;  %p1335_p1 = scmp.lt.s32.totalorder %s1784_s20, %s1333_s16  ;;  %p1336_p3 = scmp.lt.s32.totalorder %s1334_s17, %s1328_s22 }
  0xd3   : > { %939 = vmatprep.subr.bf16.mxu0 %v1417_v0  ;;  %959 = vmatprep.subr.bf16.mxu1 %v1417_v0  ;;  %v1127_v24 = vld [vmem:[#allocation11 + $0x28] sm:$0xff]   ;;  %v1128_v33 = vld [vmem:[#allocation11 + $0x30] sm:$0xff]   ;;  %v1129_v34 = vld [vmem:[#allocation11 + $0x38] sm:$0xff]   ;;  %p1331_p13 = pneg %p1330_p12 }
  0xd4   : > { %v886_v35 = vld [vmem:[#allocation10] ss:$0 sm:$0xff]  ;;  %v895_v43 = vld [vmem:[#allocation13] ss:$0 sm:$0xff]  ;;  %p1337_p2 = por %p1336_p3, %p1335_p1 }
  0xd6   : > { %940 = vmatpush3.bf16.msra.mxu0 %v1108_v3  ;;  %960 = vmatpush3.bf16.msra.mxu1 %v1116_v8  ;;  %p1338_p0 = pnand %p1337_p2, %p1331_p13 }
  0xd7   : > { %941 = vmatprep.subr.bf16.mxu0 %v1417_v0  ;;  %961 = vmatprep.subr.bf16.mxu1 %v1417_v0 }
  0xda   : > { %942 = vmatpush3.bf16.msra.mxu0 %v1109_v5  ;;  %962 = vmatpush3.bf16.msra.mxu1 %v1117_v10 }
  0xdb   : > { %943 = vmatprep.subr.bf16.mxu0 %v1417_v0  ;;  %963 = vmatprep.subr.bf16.mxu1 %v1417_v0 }
  0xde   : > { %944 = vmatpush3.bf16.msra.mxu0 %v1110_v7  ;;  %964 = vmatpush3.bf16.msra.mxu1 %v1118_v12 }
  0xdf   : > { %945 = vmatprep.subr.bf16.mxu0 %v1417_v0  ;;  %965 = vmatprep.subr.bf16.mxu1 %v1417_v0 }
  0xe2   : > { %946 = vmatpush3.bf16.msra.mxu0 %v1111_v9  ;;  %966 = vmatpush3.bf16.msra.mxu1 %v1119_v15 }
  0xe3   : > { %947 = vmatprep.subr.bf16.mxu0 %v1417_v0  ;;  %967 = vmatprep.subr.bf16.mxu1 %v1417_v0 }
  0xe6   : > { %948 = vmatpush3.bf16.msra.mxu0 %v1112_v11  ;;  %968 = vmatpush3.bf16.msra.mxu1 %v1120_v17 }
  0xe7   : > { %949 = vmatprep.subr.bf16.mxu0 %v1417_v0  ;;  %969 = vmatprep.subr.bf16.mxu1 %v1417_v0 }
  0xea   : > { %950 = vmatpush3.bf16.msra.mxu0 %v1113_v13  ;;  %970 = vmatpush3.bf16.msra.mxu1 %v1121_v18 }
  0xeb   : > { %975 = vmatprep.subr.bf16.mxu0 %v1417_v0 }
  0xed   : > { %952 = vmatmul.mubr.bf16.vlgmr.msra.gmra.mrb[0].mxu0 %v377_v16 }
  0xee   : > { %991 = vmatprep.mubr.msk.bf16.mxu0 %vm1418_vm0, %v1417_v0  ;;  %976 = vmatpush3.bf16.msra.mxu0 %v1122_v19 }
  0xef   : > { %977 = vmatprep.subr.bf16.mxu0 %v1417_v0 }
  0xf2   : > { %978 = vmatpush3.bf16.msra.mxu0 %v1123_v20 }
  0xf3   : > { %979 = vmatprep.subr.bf16.mxu0 %v1417_v0 }
  0xf6   : > { %980 = vmatpush3.bf16.msra.mxu0 %v1124_v21 }
  0xf7   : > { %981 = vmatprep.subr.bf16.mxu0 %v1417_v0 }
  0xfa   : > { %982 = vmatpush3.bf16.msra.mxu0 %v1125_v22 }
  0xfb   : > { %983 = vmatprep.subr.bf16.mxu0 %v1417_v0 }
  0xfe   : > { %984 = vmatpush3.bf16.msra.mxu0 %v1126_v23 }
  0xff   : > { %985 = vmatprep.subr.bf16.mxu0 %v1417_v0 }
 0x102   : > { %986 = vmatpush3.bf16.msra.mxu0 %v1127_v24 }
 0x103   : > { %987 = vmatprep.subr.bf16.mxu0 %v1417_v0 }
 0x106   : > { %988 = vmatpush3.bf16.msra.mxu0 %v1128_v33 }
 0x107   : > { %989 = vmatprep.subr.bf16.mxu0 %v1417_v0 }
 0x10a   : > { %990 = vmatpush3.bf16.msra.mxu0 %v1129_v34 }
 0x1c0   : > { %v483_v26 = vpop.f32.mrb[0].mxu0 }
 0x1c1   : > { %v484_v27 = vadd.f32 %v877_v25, %v483_v26  ;;  %v953_v28 = vpop.f32.mrb[1].mxu0 }
 0x1c2   : > { %v486_v29 = vpop.f32.mrb[2].mxu0 }
 0x1c3   : > { %v489_v30 = vmax.f32 %v484_v27, 0.0  ;;  %v954_v31 = vpop.f32.mrb[3].mxu0 }
 0x1c5   : > { %v490_v32 = vpack.c.bf16 %v489_v30, %v489_v30 }
 0x1c7   : > { %972 = vmatmul.mubr.bf16.vlgmr.msra.gmra.mrb[0].mxu1 %v490_v32 }
 0x29a   : > { %v596_v36 = vpop.f32.mrb[0].mxu1 }
 0x29b   : > { %v597_v37 = vadd.f32 %v886_v35, %v596_v36  ;;  %v973_v38 = vpop.f32.mrb[1].mxu1 }
 0x29c   : > { %v599_v39 = vpop.f32.mrb[2].mxu1 }
 0x29d   : > { %v602_v40 = vmax.f32 %v597_v37, 0.0  ;;  %v974_v41 = vpop.f32.mrb[3].mxu1 }
 0x29f   : > { %v603_v42 = vpack.c.bf16 %v602_v40, %v602_v40 }
 0x2a1   : > { %992 = vmatmul.mubr.bf16.vlgmr.msra.gmra.mrb[4].mxu0 %v603_v42 }
 0x374   : > { %v709_v44 = vpop.f32.mrb[4].mxu0 }
 0x375   : > { %v710_v45 = vadd.f32 %v895_v43, %v709_v44  ;;  %v993_v46 = vpop.f32.mrb[5].mxu0 }
 0x376   : > { %v712_v47 = vpop.f32.mrb[6].mxu0 }
 0x377   : > { %715 = vst [vmem:[%s374_s28] sm:$0xff] %v710_v45  ;;  %v994_v48 = vpop.f32.mrb[7].mxu0 }
 0x378   : > { %1341 = shalt.err (!%p1338_p0)
}
 0x379   : > { %s1342_s13 = scalar_lea.hbm %s1782_s21, 128  ;;  %s1346_s14 = scalar_lea.hbm %s1833_s7, 256 }
 0x37a   : > { %p1343_p4 = scmp.ne.s32.totalorder %s1782_s21, %s1342_s13  ;;  %p1347_p8 = scmp.lt.u32.totalorder %s1782_s21, %s1833_s7 }
 0x37b   : > { %p1348_p5 = scmp.lt.u32.totalorder %s1346_s14, %s1342_s13  ;;  %p1350_p6 = scmp.lt.u32.totalorder %s1342_s13, %s1782_s21 }
 0x37c   : > { %p1344_p10 = pnand %p1343_p4, %p1853_p9 }
 0x37d   : > { %p1349_p7 = por %p1348_p5, %p1347_p8 }
 0x37e   : > { %p1345_p11 = pneg %p1344_p10 }
 0x37f   : > { %p1351_p12 = por %p1350_p6, %p1349_p7 }
 0x381   : > { %p1352_p13 = pnand %p1351_p12, %p1345_p11 }
 0x383   : > { %1355 = shalt.err (!%p1352_p13)
}
 0x384   : > { %1021 = dma.vmem_to_hbm [thread:$0]  (%p1853_p9), %s1784_s20, 128, %s1782_s21, %s717_s30  }
 0x385 PF: > { %s742_s9 = sand.u32 1, %s1394_s24   ;;  %p1854_p1 = scmp.ne.s32.totalorder %s1844_s15, 0 }
 0x386   : > { %p1855_p3 = scmp.ge.s32.totalorder %s1406_s27, 2  ;;  %s743_s19 = scalar_lea.sflag [#allocation4], %s742_s9 }
 0x388   : > { %p1047_p2 = pnand %p1855_p3, %p1854_p1 }
 0x38a   : > { %1389 = dma.done.wait (!%p1047_p2), %s743_s19, 128  }
 0x38b   : > { %1391 = vsyncadd (!%p1047_p2), %s743_s19, 4294967168  ;;  %p23_p0 = scmp.ge.s32.totalorder %s1645_s11, 4   ;;  %s1856_s24 = smov %s1398_s25 }
 0x38c   : > { %s1857_s25 = smov %s1402_s26  ;;  %s1858_s26 = smov %s1656_s23 }
 0x38d   : > { %s1859_s27 = smov %s1645_s11  ;;  %25 = sbr.rel (!%p23_p0) target bundleno = 8 (0x8), region = 117 }
 0x394   :  { %748 = vsyncpa [#allocation3], 1 }
 0x395   :  { %750 = vsyncpa [#allocation3 + $0x1], 1 }
 0x396   :  { %751 = vsyncpa [#allocation6], 1 }
 0x397   :  { %752 = vsyncpa [#allocation9], 1 }
 0x398   :  { %753 = vsyncpa [#allocation12], 1 }
 0x399   :  { %754 = vsyncpa [#allocation4], 1 }
 0x39a   :  { %756 = vsyncpa [#allocation4 + $0x1], 1 }

</bundles_post_ra>
